<compile_context>
chip_gen: v7x
topology: tpu7x:2x2x1
jax: 0.10.0
libtpu: 0.0.40
codegen_flags: <defaults>
</compile_context>

<pallas_src>
import jax
import jax.numpy as jnp
from jax import lax
from jax.experimental import pallas as pl
from jax.experimental.pallas import tpu as pltpu

D = 128           # hidden dim (module default)
HEADS = 8         # number of heads (module default)
D_HEAD = D // HEADS
SCALE = 1.0 / (D_HEAD ** 0.5)   # == 0.25, exact in bf16


# --------------------------------------------------------------------------- pass 1
def _qkv_proj_kernel(x_ref, w_ref, o_ref):
    # (TR, D) @ (D, 3D) -> (TR, 3D); f32 MXU accumulation, bf16 output.
    o_ref[...] = jnp.dot(x_ref[...], w_ref[...],
                         preferred_element_type=jnp.float32).astype(o_ref.dtype)


# --------------------------------------------------------------------------- pass 2
def _flash_attn_kernel(q_ref, k_ref, v_ref, wo_ref, o_ref, m_sc, l_sc, acc_sc):
    ki = pl.program_id(2)
    nk = pl.num_programs(2)

    @pl.when(ki == 0)
    def _init():
        m_sc[...] = jnp.full(m_sc.shape, -jnp.inf, dtype=m_sc.dtype)
        l_sc[...] = jnp.zeros(l_sc.shape, dtype=l_sc.dtype)
        acc_sc[...] = jnp.zeros(acc_sc.shape, dtype=acc_sc.dtype)

    q = q_ref[0]          # (TQ,  D) bf16, already scaled by 1/sqrt(D_head)
    k = k_ref[0]          # (TKV, D) bf16
    v = v_ref[0]          # (TKV, D) bf16

    # Online softmax per head (unrolled; NT dot_general, no explicit transposes).
    # TODO(synk): if bundle dumps at TQ/TKV >= 256 show VMEM spills, switch to
    # lax.fori_loop(..., unroll=True) over heads to bound score-tile live ranges.
    for h in range(HEADS):
        lanes = slice(h * D_HEAD, (h + 1) * D_HEAD)   # head's 16-lane window
        col = slice(h, h + 1)                          # head's m/l column
        s = lax.dot_general(q[:, lanes], k[:, lanes], (((1,), (1,)), ((), ())),
                            preferred_element_type=jnp.float32)   # (TQ, TKV) f32
        m_prev = m_sc[:, col]                                      # (TQ, 1)
        m_new = jnp.maximum(m_prev, jnp.max(s, axis=-1, keepdims=True))
        alpha = jnp.exp(m_prev - m_new)
        p = jnp.exp(s - m_new)                                     # f32 softmax math
        l_sc[:, col] = alpha * l_sc[:, col] + jnp.sum(p, axis=-1, keepdims=True)
        acc_sc[:, lanes] = alpha * acc_sc[:, lanes] + jnp.dot(
            p.astype(jnp.bfloat16), v[:, lanes], preferred_element_type=jnp.float32)
        m_sc[:, col] = m_new

    @pl.when(ki == nk - 1)
    def _finalize():
        # Normalize each head's lane window in place (EUP reciprocal), then a single
        # lane-dense (TQ,128) x (128,128) fused output projection.
        for h in range(HEADS):
            lanes = slice(h * D_HEAD, (h + 1) * D_HEAD)
            inv_l = pl.reciprocal(l_sc[:, h:h + 1], approx=True)
            acc_sc[:, lanes] = acc_sc[:, lanes] * inv_l
        ctx = acc_sc[...].astype(jnp.bfloat16)                     # (TQ, D)
        o_ref[0] = jnp.dot(ctx, wo_ref[...],
                           preferred_element_type=jnp.float32).astype(o_ref.dtype)


def _pick_tile(n, max_tile):
    for t in (max_tile, 256, 128, 64, 32, 16, 8):
        if t <= n and n % t == 0:
            return t
    return n


def self_attention(x, w_Q, w_K, w_V, w_out):
    """x: (B, N, D); weights: (D, D). Returns (B, N, D) in x.dtype."""
    B, N, d = x.shape
    assert d == D, f"expected hidden dim {D}, got {d}"

    # Weight prep (hoist out of any hot loop in real use): fused (D, 3D) QKV weight
    # with the 1/sqrt(D_head) scale folded into the Q columns (0.25 -> exact in bf16).
    w_qkv = jnp.concatenate([w_Q * SCALE, w_K, w_V], axis=1).astype(jnp.bfloat16)
    w_o = w_out.astype(jnp.bfloat16)
    x_bf = x.astype(jnp.bfloat16)

    # ---------------- pass 1: fused QKV projection (run once, no re-projection) -----
    rows = B * N
    tile_r = _pick_tile(rows, 512)
    assert rows % tile_r == 0, f"rows={rows} not tileable"
    proj_cost = pl.CostEstimate(
        flops=2 * rows * D * 3 * D,
        transcendentals=0,
        bytes_accessed=rows * D * 2 + D * 3 * D * 2 + rows * 3 * D * 2)
    qkv = pl.pallas_call(
        _qkv_proj_kernel,
        out_shape=jax.ShapeDtypeStruct((rows, 3 * D), jnp.bfloat16),
        grid_spec=pltpu.PrefetchScalarGridSpec(
            num_scalar_prefetch=0,
            grid=(rows // tile_r,),
            in_specs=[
                pl.BlockSpec((tile_r, D), lambda i: (i, 0)),
                pl.BlockSpec((D, 3 * D), lambda i: (0, 0)),
            ],
            out_specs=pl.BlockSpec((tile_r, 3 * D), lambda i: (i, 0)),
        ),
        compiler_params=pltpu.CompilerParams(
            dimension_semantics=("parallel",),
            vmem_limit_bytes=48 * 1024 * 1024,
        ),
        cost_estimate=proj_cost,
    )(x_bf.reshape(rows, D), w_qkv)
    qkv = qkv.reshape(B, N, 3 * D)   # free leading-dim split

    # ---------------- pass 2: flash attention + fused output projection -------------
    tile_q = _pick_tile(N, 256)      # keep B * q_tiles >= 2 for v7x megacore sharding
    tile_kv = _pick_tile(N, 512)
    assert N % tile_q == 0 and N % tile_kv == 0, f"N={N} not tileable"
    grid = (B, N // tile_q, N // tile_kv)

    attn_cost = pl.CostEstimate(
        flops=4 * B * N * N * D + 2 * B * N * D * D,
        transcendentals=B * HEADS * N * N,
        bytes_accessed=(B * (N // tile_q) * N * 2 * D * 2   # K/V streamed per q-tile
                        + B * N * D * 2                     # Q
                        + B * N * D * x.dtype.itemsize      # output
                        + D * D * 2))                       # W_out

    # qkv is passed three times with different last-dim block indices (0 / 1 / 2) so
    # each stream DMAs only the 128-lane slab it needs.
    return pl.pallas_call(
        _flash_attn_kernel,
        out_shape=jax.ShapeDtypeStruct((B, N, D), x.dtype),
        grid_spec=pltpu.PrefetchScalarGridSpec(
            num_scalar_prefetch=0,
            grid=grid,
            in_specs=[
                pl.BlockSpec((1, tile_q, D), lambda b, qi, ki: (b, qi, 0)),   # Q
                pl.BlockSpec((1, tile_kv, D), lambda b, qi, ki: (b, ki, 1)),  # K
                pl.BlockSpec((1, tile_kv, D), lambda b, qi, ki: (b, ki, 2)),  # V
                pl.BlockSpec((D, D), lambda b, qi, ki: (0, 0)),               # W_out
            ],
            out_specs=pl.BlockSpec((1, tile_q, D), lambda b, qi, ki: (b, qi, 0)),
            scratch_shapes=[
                pltpu.VMEM((tile_q, HEADS), jnp.float32),   # running row max (col / head)
                pltpu.VMEM((tile_q, HEADS), jnp.float32),   # running denom
                pltpu.VMEM((tile_q, D), jnp.float32),       # unnormalized ctx slab
            ],
        ),
        compiler_params=pltpu.CompilerParams(
            dimension_semantics=("parallel", "parallel", "arbitrary"),
            # explicit scoped-VMEM budget: raises v5e's 16 MiB default, stays well
            # under v7x's 64 MiB physical ceiling.
            vmem_limit_bytes=48 * 1024 * 1024,
        ),
        cost_estimate=attn_cost,
    )(qkv, qkv, qkv, w_o)


def _reference(x, w_Q, w_K, w_V, w_out):
    B, N, d = x.shape
    q = x @ w_Q
    k = x @ w_K
    v = x @ w_V
    q = q.reshape(B, N, HEADS, D_HEAD).transpose(0, 2, 1, 3)
    k = k.reshape(B, N, HEADS, D_HEAD).transpose(0, 2, 1, 3)
    v = v.reshape(B, N, HEADS, D_HEAD).transpose(0, 2, 1, 3)
    att = jnp.einsum("bhnd,bhmd->bhnm", q, k) * SCALE
    att = jax.nn.softmax(att, axis=-1)
    out = jnp.einsum("bhnm,bhmd->bhnd", att, v)
    out = out.transpose(0, 2, 1, 3).reshape(B, N, d)
    return out @ w_out


if __name__ == "__main__":
    key = jax.random.PRNGKey(0)
    kx, kq, kk, kv, ko = jax.random.split(key, 5)

    B, N = 2, 8
    x = jax.random.normal(kx, (B, N, D), dtype=jnp.float32)
    w_Q = jax.random.normal(kq, (D, D), dtype=jnp.float32) * 0.05
    w_K = jax.random.normal(kk, (D, D), dtype=jnp.float32) * 0.05
    w_V = jax.random.normal(kv, (D, D), dtype=jnp.float32) * 0.05
    w_out = jax.random.normal(ko, (D, D), dtype=jnp.float32) * 0.05

    out = jax.block_until_ready(self_attention(x, w_Q, w_K, w_V, w_out))
    ref = _reference(x, w_Q, w_K, w_V, w_out)

    assert out.shape == (B, N, D)
    # bf16 matmul operands -> widened tolerance (accumulation & softmax stay f32)
    max_diff = jnp.max(jnp.abs(out - ref))
    assert jnp.allclose(out, ref, atol=3e-2, rtol=3e-2), f"mismatch; max abs diff = {max_diff}"

    print("KERNEL_OK")
</pallas_src>

<mosaic_0001>
module attributes {stable_mosaic.version = 11 : i64} {
  func.func @_qkv_proj_kernel(%arg0: i32, %arg1: memref<16x128xbf16, #tpu.memory_space<vmem>>, %arg2: memref<128x384xbf16, #tpu.memory_space<vmem>>, %arg3: memref<16x384xbf16, #tpu.memory_space<vmem>>) attributes {dimension_semantics = [#tpu.dimension_semantics<parallel>], iteration_bounds = array<i64: 1>, scalar_prefetch = 0 : i64, scratch_operands = 0 : i64, tpu.core_type = #tpu.core_type<tc>, window_params = [{transform_indices = @transform_0, window_bounds = array<i64: 16, 128>}, {pipeline_mode = #tpu.pipeline_mode<synchronous>, transform_indices = @transform_1, window_bounds = array<i64: 128, 384>}, {transform_indices = @transform_2, window_bounds = array<i64: 16, 384>}]} {
    %c0 = arith.constant 0 : index
    %c0_0 = arith.constant 0 : index
    %0 = vector.load %arg1[%c0, %c0_0] : memref<16x128xbf16, #tpu.memory_space<vmem>>, vector<16x128xbf16>
    %c0_1 = arith.constant 0 : index
    %c0_2 = arith.constant 0 : index
    %1 = vector.load %arg2[%c0_1, %c0_2] : memref<128x384xbf16, #tpu.memory_space<vmem>>, vector<128x384xbf16>
    %cst = arith.constant dense<0.000000e+00> : vector<16x384xf32>
    %2 = tpu.matmul %0, %1, %cst {dimension_numbers = #tpu.dot_dimension_numbers<[1], [0], [0], [1], [0, 0, 1, 1], [], []>} : vector<16x128xbf16>, vector<128x384xbf16>, vector<16x384xf32> -> vector<16x384xf32>
    %3 = arith.truncf %2 : vector<16x384xf32> to vector<16x384xbf16>
    %c0_3 = arith.constant 0 : index
    %c0_4 = arith.constant 0 : index
    %4 = vector.load %arg3[%c0_3, %c0_4] : memref<16x384xbf16, #tpu.memory_space<vmem>>, vector<16x384xbf16>
    tpu.vector_store %arg3[%c0_3, %c0_4], %3 {strides = array<i32>} : memref<16x384xbf16, #tpu.memory_space<vmem>>, vector<16x384xbf16>,
    return
  }
  func.func @transform_0(%arg0: i32) -> (i32, i32) {
    %c0_i32 = arith.constant 0 : i32
    %c0_i32_0 = arith.constant 0 : i32
    return %arg0, %c0_i32 : i32, i32
  }
  func.func @transform_1(%arg0: i32) -> (i32, i32) {
    %c0_i32 = arith.constant 0 : i32
    %c0_i32_0 = arith.constant 0 : i32
    %c0_i32_1 = arith.constant 0 : i32
    return %c0_i32, %c0_i32_0 : i32, i32
  }
  func.func @transform_2(%arg0: i32) -> (i32, i32) {
    %c0_i32 = arith.constant 0 : i32
    %c0_i32_0 = arith.constant 0 : i32
    return %arg0, %c0_i32 : i32, i32
  }
}

</mosaic_0001>

<bundles_post_ra>
// kernel: tpu_custom_call.1
= control target key start
LH: loop header
LB: loop body
LE: loop exit
PB: predicated region body
PF: predicated region fallthrough
CT: control target
= control target key end

     0   :  { %7 = vsyncpa [#allocation3], 0  ;;  %s579_s0 = inlined_call_operand.hbm [shape: bf16[16,128], index: 0, kind: input, shape index: {}]   ;;  %s580_s1 = inlined_call_operand.hbm [shape: bf16[128,384], index: 1, kind: input, shape index: {}]   ;;  %s581_s2 = inlined_call_operand.hbm [shape: bf16[16,384], index: 2, kind: output, shape index: {}]  }
   0x1   :  { %8 = vsyncpa [#allocation6], 0 }
   0x2   :  { %9 = vsyncpa [#allocation4], 0  ;;  %s512_s9 = smov [#allocation2]   ;;  %s440_s13 = scalar_lea.hbm %s579_s0, 128 }
   0x3   :  { %s15_s10 = sshll.u32 %s512_s9, 4  ;;  %p441_p0 = scmp.ne.s32.totalorder %s579_s0, %s440_s13  ;;  %s16_s10 = int_to_ptr.vmem [resolvable:$true] %s15_s10 }
   0x4   :  { %p444_p1 = scmp.lt.u32.totalorder %s440_s13, %s579_s0 }
   0x6   :  { %p446_p2 = pnand %p444_p1, %p441_p0 }
   0x8   :  { %449 = shalt.err (!%p446_p2)
}
   0x9   :  { %s450_s18 = scalar_lea.vmem %s16_s10, 128  ;;  %p455_p4 = scmp.lt.s32.totalorder %s16_s10, %s16_s10 }
   0xa   :  { %p451_p3 = scmp.ne.s32.totalorder %s16_s10, %s450_s18  ;;  %p456_p5 = scmp.lt.s32.totalorder %s450_s18, %s450_s18 }
   0xc   :  { %p457_p6 = por %p456_p5, %p455_p4 }
   0xe   :  { %p458_p7 = pnand %p457_p6, %p451_p3 }
  0x10   :  { %461 = shalt.err (!%p458_p7)
}
  0x11   :  { %s513_s19 = smov 64   ;;  %s514_s20 = smov 4  }
  0x12   :  { %21 = dma.hbm_to_vmem [thread:$0]  %s579_s0, 128, %s16_s10, [#allocation3], %s513_s19, %s513_s19, %s514_s20  }
  0x13   :  { %s515_s23 = smov [#allocation5]   ;;  %s462_s27 = scalar_lea.hbm %s580_s1, 3072 }
  0x14   :  { %s27_s24 = sshll.u32 %s515_s23, 4  ;;  %p463_p8 = scmp.ne.s32.totalorder %s580_s1, %s462_s27  ;;  %s28_s24 = int_to_ptr.vmem [resolvable:$true] %s27_s24 }
  0x15   :  { %p466_p9 = scmp.lt.u32.totalorder %s462_s27, %s580_s1 }
  0x17   :  { %p468_p10 = pnand %p466_p9, %p463_p8 }
  0x19   :  { %471 = shalt.err (!%p468_p10)
}
  0x1a   :  { %s472_s4 = scalar_lea.vmem %s28_s24, 3072  ;;  %p477_p12 = scmp.lt.s32.totalorder %s28_s24, %s28_s24 }
  0x1b   :  { %p473_p11 = scmp.ne.s32.totalorder %s28_s24, %s472_s4  ;;  %p478_p13 = scmp.lt.s32.totalorder %s472_s4, %s472_s4 }
  0x1d   :  { %p479_p0 = por %p478_p13, %p477_p12 }
  0x1f   :  { %p480_p1 = pnand %p479_p0, %p473_p11 }
  0x21   :  { %483 = shalt.err (!%p480_p1)
}
  0x22   :  { %s516_s0 = smov 192   ;;  %s517_s5 = smov 12  }
  0x23   :  { %33 = dma.hbm_to_vmem [thread:$0]  %s580_s1, 3072, %s28_s24, [#allocation6], %s516_s0, %s516_s0, %s517_s5  }
  0x24   :  { %506 = dma.done.wait [#allocation3], 128  }
  0x25   :  { %507 = vsyncadd [#allocation3], 4294967168 }
  0x26   :  { %508 = dma.done.wait [#allocation6], 3072  }
  0x27   :  { %509 = vsyncadd [#allocation6], 4294964224  ;;  %v518_v0 = vmov 0.0   ;;  %vm519_vm0 = vmmov 0   ;;  %v520_v1 = vmov 0   ;;  %v439_v26 = vld [vmem:[#allocation2] sm:$0xff]  }
  0x28   :  { %377 = vmatprep.subr.bf16.mxu1 %v518_v0  ;;  %393 = vmatprep.mubr.msk.bf16.mxu1 %vm519_vm0, %v518_v0  ;;  %v407_v2 = vld [vmem:[#allocation5 + $0x4] ss:$12 sps:$4 sm:$0xff]   ;;  %v409_v3 = vld [vmem:[#allocation5 + $0x8] ss:$12 sps:$4 sm:$0xff]   ;;  %v410_v4 = vld [vmem:[#allocation5] ss:$12 sps:$4 sm:$0xff]  }
  0x29   :  { %241 = vmatprep.mubr.bf16.mxu0 %v520_v1  ;;  %209 = vmatprep.subr.bf16.mxu0 %v407_v2  ;;  %v411_v5 = vld [vmem:[#allocation5 + $0x1c] ss:$12 sps:$4 sm:$0xff]   ;;  %v413_v6 = vld [vmem:[#allocation5 + $0x20] ss:$12 sps:$4 sm:$0xff]   ;;  %v414_v7 = vld [vmem:[#allocation5 + $0x18] ss:$12 sps:$4 sm:$0xff]  }
  0x2a   :  { %378 = vmatpush3.bf16.msra.mxu1 %v409_v3  ;;  %210 = vmatpush1.bf16.msra.mxu0 %v410_v4  ;;  %v415_v8 = vld [vmem:[#allocation5 + $0x34] ss:$12 sps:$4 sm:$0xff]   ;;  %v417_v9 = vld [vmem:[#allocation5 + $0x38] ss:$12 sps:$4 sm:$0xff]   ;;  %v418_v10 = vld [vmem:[#allocation5 + $0x30] ss:$12 sps:$4 sm:$0xff]  }
  0x2b   :  { %379 = vmatprep.subr.bf16.mxu1 %v518_v0  ;;  %211 = vmatprep.subr.bf16.mxu0 %v411_v5  ;;  %v419_v11 = vld [vmem:[#allocation5 + $0x4c] ss:$12 sps:$4 sm:$0xff]   ;;  %v421_v12 = vld [vmem:[#allocation5 + $0x50] ss:$12 sps:$4 sm:$0xff]   ;;  %v422_v13 = vld [vmem:[#allocation5 + $0x48] ss:$12 sps:$4 sm:$0xff]  }
  0x2c   :  { %v423_v14 = vld [vmem:[#allocation5 + $0x64] ss:$12 sps:$4 sm:$0xff]   ;;  %v425_v15 = vld [vmem:[#allocation5 + $0x68] ss:$12 sps:$4 sm:$0xff]   ;;  %v426_v16 = vld [vmem:[#allocation5 + $0x60] ss:$12 sps:$4 sm:$0xff]  }
  0x2d   :  { %v427_v17 = vld [vmem:[#allocation5 + $0x7c] ss:$12 sps:$4 sm:$0xff]   ;;  %v429_v18 = vld [vmem:[#allocation5 + $0x80] ss:$12 sps:$4 sm:$0xff]   ;;  %v430_v19 = vld [vmem:[#allocation5 + $0x78] ss:$12 sps:$4 sm:$0xff]  }
  0x2e   :  { %380 = vmatpush3.bf16.msra.mxu1 %v413_v6  ;;  %212 = vmatpush1.bf16.msra.mxu0 %v414_v7  ;;  %v431_v20 = vld [vmem:[#allocation5 + $0x94] ss:$12 sps:$4 sm:$0xff]   ;;  %v433_v21 = vld [vmem:[#allocation5 + $0x98] ss:$12 sps:$4 sm:$0xff]   ;;  %v434_v22 = vld [vmem:[#allocation5 + $0x90] ss:$12 sps:$4 sm:$0xff]  }
  0x2f   :  { %381 = vmatprep.subr.bf16.mxu1 %v518_v0  ;;  %213 = vmatprep.subr.bf16.mxu0 %v415_v8  ;;  %v435_v23 = vld [vmem:[#allocation5 + $0xac] ss:$12 sps:$4 sm:$0xff]   ;;  %v437_v24 = vld [vmem:[#allocation5 + $0xb0] ss:$12 sps:$4 sm:$0xff]   ;;  %v438_v25 = vld [vmem:[#allocation5 + $0xa8] ss:$12 sps:$4 sm:$0xff]  }
  0x30   :  { %s521_s1 = smov [#allocation7]  }
  0x31   :  { %s322_s8 = sshll.u32 %s521_s1, 4  ;;  %s323_s8 = int_to_ptr.vmem [resolvable:$true] %s322_s8 }
  0x32   :  { %382 = vmatpush3.bf16.msra.mxu1 %v417_v9  ;;  %214 = vmatpush1.bf16.msra.mxu0 %v418_v10  ;;  %s484_s9 = scalar_lea.vmem %s323_s8, 384  ;;  %p489_p3 = scmp.lt.s32.totalorder %s323_s8, %s323_s8 }
  0x33   :  { %383 = vmatprep.subr.bf16.mxu1 %v518_v0  ;;  %215 = vmatprep.subr.bf16.mxu0 %v419_v11  ;;  %p485_p2 = scmp.ne.s32.totalorder %s323_s8, %s484_s9  ;;  %p490_p4 = scmp.lt.s32.totalorder %s484_s9, %s484_s9 }
  0x35   :  { %p491_p5 = por %p490_p4, %p489_p3 }
  0x36   :  { %384 = vmatpush3.bf16.msra.mxu1 %v421_v12  ;;  %216 = vmatpush1.bf16.msra.mxu0 %v422_v13 }
  0x37   :  { %385 = vmatprep.subr.bf16.mxu1 %v518_v0  ;;  %217 = vmatprep.subr.bf16.mxu0 %v423_v14  ;;  %p492_p6 = pnand %p491_p5, %p485_p2 }
  0x3a   :  { %386 = vmatpush3.bf16.msra.mxu1 %v425_v15  ;;  %218 = vmatpush1.bf16.msra.mxu0 %v426_v16 }
  0x3b   :  { %387 = vmatprep.subr.bf16.mxu1 %v518_v0  ;;  %219 = vmatprep.subr.bf16.mxu0 %v427_v17 }
  0x3e   :  { %388 = vmatpush3.bf16.msra.mxu1 %v429_v18  ;;  %220 = vmatpush1.bf16.msra.mxu0 %v430_v19 }
  0x3f   :  { %389 = vmatprep.subr.bf16.mxu1 %v518_v0  ;;  %221 = vmatprep.subr.bf16.mxu0 %v431_v20 }
  0x42   :  { %390 = vmatpush3.bf16.msra.mxu1 %v433_v21  ;;  %222 = vmatpush1.bf16.msra.mxu0 %v434_v22 }
  0x43   :  { %391 = vmatprep.subr.bf16.mxu1 %v518_v0  ;;  %223 = vmatprep.subr.bf16.mxu0 %v435_v23 }
  0x46   :  { %392 = vmatpush3.bf16.msra.mxu1 %v437_v24  ;;  %224 = vmatpush1.bf16.msra.mxu0 %v438_v25 }
  0x49   :  { %394 = vmatmul.mubr.bf16.vlgmr.msra.gmra.mrb[0].mxu1 %v439_v26  ;;  %242 = vmatmul.mubr.bf16.vlgmr.msra.gmra.mrb[0].mxu0 %v439_v26 }
 0x11c   :  { %v286_v27 = vpop.f32.mrb[0].mxu1  ;;  %v243_v29 = vpop.f32.mrb[0].mxu0 }
 0x11d   :  { %v365_v28 = vpack.c.bf16 %v286_v27, %v286_v27  ;;  %v395_v30 = vpop.f32.mrb[1].mxu1  ;;  %v245_v31 = vpop.f32.mrb[1].mxu0 }
 0x11e   :  { %v289_v32 = vpop.f32.mrb[2].mxu1  ;;  %v364_v33 = vpack.c.bf16 %v245_v31, %v243_v29  ;;  %v247_v35 = vpop.f32.mrb[2].mxu0 }
 0x11f   :  { %314 = vst [vmem:[#allocation7 + $0x8] sm:$0xf] %v365_v28  ;;  %v367_v34 = vpack.c.bf16 %v289_v32, %v289_v32  ;;  %v396_v36 = vpop.f32.mrb[3].mxu1  ;;  %v249_v37 = vpop.f32.mrb[3].mxu0 }
 0x120   :  { %313 = vst [vmem:[#allocation7] sm:$0xff] %v364_v33  ;;  %v366_v38 = vpack.c.bf16 %v249_v37, %v247_v35 }
 0x121   :  { %316 = vst [vmem:[#allocation7 + $0x14] sm:$0xf] %v367_v34 }
 0x122   :  { %315 = vst [vmem:[#allocation7 + $0xc] sm:$0xff] %v366_v38 }
 0x123   :  { %495 = shalt.err (!%p492_p6)
}
 0x124   :  { %s496_s12 = scalar_lea.hbm %s581_s2, 384 }
 0x125   :  { %p497_p7 = scmp.ne.s32.totalorder %s581_s2, %s496_s12  ;;  %p500_p8 = scmp.lt.u32.totalorder %s496_s12, %s581_s2 }
 0x127   :  { %p502_p9 = pnand %p500_p8, %p497_p7 }
 0x129   :  { %505 = shalt.err (!%p502_p9)
}
 0x12a   :  { %328 = dma.vmem_to_hbm [thread:$0]  %s323_s8, 384, %s581_s2, [#allocation4], %s516_s0, %s516_s0, %s517_s5  }
 0x12b   :  { %510 = dma.done.wait [#allocation4], 384  }
 0x12c   :  { %511 = vsyncadd [#allocation4], 4294966912 }
 0x12d   :  { %332 = vsyncpa [#allocation3], 1 }
 0x12e   :  { %333 = vsyncpa [#allocation6], 1 }
 0x12f   :  { %334 = vsyncpa [#allocation4], 1 }

</bundles_post_ra>
